<compile_context>
chip_gen: v6e
topology: v6e:2x2x1
jax: 0.10.0
libtpu: 0.0.40
codegen_flags: <defaults>
</compile_context>

<pallas_src>
import functools

import jax
import jax.numpy as jnp
from jax.experimental import pallas as pl
from jax.experimental.pallas import tpu as pltpu


def _residual_connection_kernel(seed_ref, x_ref, gamma_ref, beta_ref, w_ref, b_ref,
                                o_ref, *, dropout_p, eps, tile_rows, d_model):
    x = x_ref[...].astype(jnp.float32)                               # (TN, D)

    # --- LayerNormalization over the feature (lane) axis ---
    mean = jnp.mean(x, axis=-1, keepdims=True)
    xc = x - mean
    var = jnp.mean(xc * xc, axis=-1, keepdims=True)                  # biased variance
    y = xc * jax.lax.rsqrt(var + eps)
    y = y * gamma_ref[...] + beta_ref[...]                           # (TN, D)

    # --- sublayer(norm(x)) : Linear(D, D) on the MXU, bf16 in / f32 accumulate ---
    z = jnp.dot(y.astype(jnp.bfloat16), w_ref[...],
                preferred_element_type=jnp.float32) + b_ref[...]     # (TN, D)

    # --- dropout (train semantics: keep w.p. 1-p, scale kept values by 1/(1-p)) ---
    if dropout_p > 0.0:
        seed_u = seed_ref[0].astype(jnp.uint32)
        row = (jax.lax.broadcasted_iota(jnp.int32, z.shape, 0)
               + pl.program_id(0) * tile_rows)                       # global token index
        col = jax.lax.broadcasted_iota(jnp.int32, z.shape, 1)
        h = row.astype(jnp.uint32) * jnp.uint32(d_model) + col.astype(jnp.uint32)
        h = h + seed_u * jnp.uint32(0x9E3779B1)
        # murmur3 fmix32 — cheap stateless bit mixer, all VPU integer ops
        h = h ^ (h >> 16)
        h = h * jnp.uint32(0x85EBCA6B)
        h = h ^ (h >> 13)
        h = h * jnp.uint32(0xC2B2AE35)
        h = h ^ (h >> 16)
        threshold = jnp.uint32(min(int(dropout_p * 4294967296.0), 4294967295))
        keep = h >= threshold                                        # P(keep) = 1 - p
        z = jnp.where(keep, z * jnp.float32(1.0 / (1.0 - dropout_p)), jnp.float32(0.0))

    # --- residual add ---
    o_ref[...] = (x + z).astype(o_ref.dtype)


def residual_connection(x2d, gamma, beta, w, b, seed, *, dropout_p, eps=1e-6,
                        max_tile_rows=512):
    """Fused x + dropout(Linear(LayerNorm(x))).

    x2d: (N, D) f32. gamma/beta/b: (1, D) f32. w: (D, D) (cast to bf16). seed: (1,) i32.
    """
    N, D = x2d.shape
    assert 0.0 <= dropout_p < 1.0

    # Token tile: full N if it is small, otherwise a multiple of 8 up to
    # max_tile_rows — double-buffered (TN, D) x/out tiles plus the resident
    # (D, D) bf16 weight stay comfortably under the scoped VMEM limit on
    # v5e/v6e/v7x for transformer widths.
    if N <= max_tile_rows:
        tn = N
    else:
        tn = max(8, (max_tile_rows // 8) * 8)
    grid = (pl.cdiv(N, tn),)

    kernel = functools.partial(_residual_connection_kernel,
                               dropout_p=float(dropout_p), eps=float(eps),
                               tile_rows=tn, d_model=D)

    w_bf16 = w.astype(jnp.bfloat16)   # halve weight DMA + VMEM residency

    return pl.pallas_call(
        kernel,
        out_shape=jax.ShapeDtypeStruct((N, D), x2d.dtype),
        grid_spec=pl.GridSpec(
            grid=grid,
            in_specs=[
                pl.BlockSpec(memory_space=pltpu.MemorySpace.SMEM),    # seed scalar
                pl.BlockSpec((tn, D), lambda i: (i, 0)),              # x token tile
                pl.BlockSpec((1, D), lambda i: (0, 0)),               # layernorm gamma
                pl.BlockSpec((1, D), lambda i: (0, 0)),               # layernorm beta
                pl.BlockSpec((D, D), lambda i: (0, 0)),               # sublayer weight (bf16, resident)
                pl.BlockSpec((1, D), lambda i: (0, 0)),               # sublayer bias
            ],
            out_specs=pl.BlockSpec((tn, D), lambda i: (i, 0)),
        ),
        compiler_params=pltpu.CompilerParams(
            dimension_semantics=("parallel",),                        # megacore sharding on v7x
        ),
    )(seed, x2d, gamma, beta, w_bf16, b)


if __name__ == "__main__":
    # Small transformer-ish shapes; d_model=128 keeps the feature axis lane-dense.
    batch, seq, d_model = 2, 8, 128
    dropout_p = 0.1

    key = jax.random.PRNGKey(0)
    kx, kw = jax.random.split(key)

    x = jax.random.normal(kx, (batch, seq, d_model), dtype=jnp.float32)

    # Deterministic parameter init (synthetic, no checkpoint load):
    gamma = jnp.ones((1, d_model), dtype=jnp.float32)                 # LayerNorm scale
    beta = jnp.zeros((1, d_model), dtype=jnp.float32)                 # LayerNorm shift
    w = jax.random.normal(kw, (d_model, d_model), dtype=jnp.float32) * 0.02
    b = jnp.zeros((1, d_model), dtype=jnp.float32)
    seed = jnp.array([0], dtype=jnp.int32)

    x2d = x.reshape(batch * seq, d_model)

    # Sanity check at dropout_p=0 against a pure-JAX reference (loose tol for bf16 matmul).
    out_eval = residual_connection(x2d, gamma, beta, w, b, seed, dropout_p=0.0)
    mean = jnp.mean(x2d, axis=-1, keepdims=True)
    var = jnp.mean((x2d - mean) ** 2, axis=-1, keepdims=True)
    y_ref = (x2d - mean) * jax.lax.rsqrt(var + 1e-6) * gamma + beta
    ref = x2d + (y_ref @ w + b)
    assert jnp.allclose(out_eval, ref, atol=3e-2, rtol=3e-2), "mismatch vs reference"

    # Train-mode run with dropout.
    out2d = residual_connection(x2d, gamma, beta, w, b, seed, dropout_p=dropout_p)
    out = out2d.reshape(batch, seq, d_model)

    jax.block_until_ready(out)
    assert out.shape == (batch, seq, d_model)
    assert bool(jnp.isfinite(out).all())
    print("KERNEL_OK")
</pallas_src>

<mosaic_0001>
module attributes {stable_mosaic.version = 11 : i64} {
  func.func @_residual_connection_kernel(%arg0: i32, %arg1: memref<1xi32, #tpu.memory_space<smem>>, %arg2: memref<16x128xf32, #tpu.memory_space<vmem>>, %arg3: memref<1x128xf32, #tpu.memory_space<vmem>>, %arg4: memref<1x128xf32, #tpu.memory_space<vmem>>, %arg5: memref<128x128xbf16, #tpu.memory_space<vmem>>, %arg6: memref<1x128xf32, #tpu.memory_space<vmem>>, %arg7: memref<16x128xf32, #tpu.memory_space<vmem>>) attributes {dimension_semantics = [#tpu.dimension_semantics<parallel>], iteration_bounds = array<i64: 1>, scalar_prefetch = 0 : i64, scratch_operands = 0 : i64, tpu.core_type = #tpu.core_type<tc>, window_params = [{transform_indices = @transform_0, window_bounds = array<i64: 1>}, {transform_indices = @transform_1, window_bounds = array<i64: 16, 128>}, {pipeline_mode = #tpu.pipeline_mode<synchronous>, transform_indices = @transform_2, window_bounds = array<i64: 1, 128>}, {pipeline_mode = #tpu.pipeline_mode<synchronous>, transform_indices = @transform_3, window_bounds = array<i64: 1, 128>}, {pipeline_mode = #tpu.pipeline_mode<synchronous>, transform_indices = @transform_4, window_bounds = array<i64: 128, 128>}, {pipeline_mode = #tpu.pipeline_mode<synchronous>, transform_indices = @transform_5, window_bounds = array<i64: 1, 128>}, {transform_indices = @transform_6, window_bounds = array<i64: 16, 128>}]} {
    %c0 = arith.constant 0 : index
    %c0_0 = arith.constant 0 : index
    %0 = vector.load %arg2[%c0, %c0_0] : memref<16x128xf32, #tpu.memory_space<vmem>>, vector<16x128xf32>
    %cst = arith.constant dense<0.000000e+00> : vector<16xf32>
    %1 = vector.multi_reduction <add>, %0, %cst [1] : vector<16x128xf32> to vector<16xf32>
    %2 = vector.shape_cast %1 : vector<16xf32> to vector<16x1xf32>
    %cst_1 = arith.constant 1.280000e+02 : f32
    %3 = vector.broadcast %cst_1 : f32 to vector<16x1xf32>
    %4 = arith.divf %2, %3 : vector<16x1xf32>
    %5 = vector.broadcast %4 : vector<16x1xf32> to vector<16x128xf32>
    %6 = arith.subf %0, %5 : vector<16x128xf32>
    %7 = arith.mulf %6, %6 : vector<16x128xf32>
    %cst_2 = arith.constant dense<0.000000e+00> : vector<16xf32>
    %8 = vector.multi_reduction <add>, %7, %cst_2 [1] : vector<16x128xf32> to vector<16xf32>
    %9 = vector.shape_cast %8 : vector<16xf32> to vector<16x1xf32>
    %cst_3 = arith.constant 1.280000e+02 : f32
    %10 = vector.broadcast %cst_3 : f32 to vector<16x1xf32>
    %11 = arith.divf %9, %10 : vector<16x1xf32>
    %cst_4 = arith.constant 9.99999997E-7 : f32
    %12 = vector.broadcast %cst_4 : f32 to vector<16x1xf32>
    %13 = arith.addf %11, %12 : vector<16x1xf32>
    %14 = math.rsqrt %13 : vector<16x1xf32>
    %15 = vector.broadcast %14 : vector<16x1xf32> to vector<16x128xf32>
    %16 = arith.mulf %6, %15 : vector<16x128xf32>
    %c0_5 = arith.constant 0 : index
    %c0_6 = arith.constant 0 : index
    %17 = vector.load %arg3[%c0_5, %c0_6] : memref<1x128xf32, #tpu.memory_space<vmem>>, vector<1x128xf32>
    %18 = vector.broadcast %17 : vector<1x128xf32> to vector<16x128xf32>
    %19 = arith.mulf %16, %18 : vector<16x128xf32>
    %c0_7 = arith.constant 0 : index
    %c0_8 = arith.constant 0 : index
    %20 = vector.load %arg4[%c0_7, %c0_8] : memref<1x128xf32, #tpu.memory_space<vmem>>, vector<1x128xf32>
    %21 = vector.broadcast %20 : vector<1x128xf32> to vector<16x128xf32>
    %22 = arith.addf %19, %21 : vector<16x128xf32>
    %23 = arith.truncf %22 : vector<16x128xf32> to vector<16x128xbf16>
    %c0_9 = arith.constant 0 : index
    %c0_10 = arith.constant 0 : index
    %24 = vector.load %arg5[%c0_9, %c0_10] : memref<128x128xbf16, #tpu.memory_space<vmem>>, vector<128x128xbf16>
    %cst_11 = arith.constant dense<0.000000e+00> : vector<16x128xf32>
    %25 = tpu.matmul %23, %24, %cst_11 {dimension_numbers = #tpu.dot_dimension_numbers<[1], [0], [0], [1], [0, 0, 1, 1], [], []>} : vector<16x128xbf16>, vector<128x128xbf16>, vector<16x128xf32> -> vector<16x128xf32>
    %c0_12 = arith.constant 0 : index
    %c0_13 = arith.constant 0 : index
    %26 = vector.load %arg6[%c0_12, %c0_13] : memref<1x128xf32, #tpu.memory_space<vmem>>, vector<1x128xf32>
    %27 = vector.broadcast %26 : vector<1x128xf32> to vector<16x128xf32>
    %28 = arith.addf %25, %27 : vector<16x128xf32>
    %29 = arith.addf %0, %28 : vector<16x128xf32>
    %c0_14 = arith.constant 0 : index
    %c0_15 = arith.constant 0 : index
    %30 = vector.load %arg7[%c0_14, %c0_15] : memref<16x128xf32, #tpu.memory_space<vmem>>, vector<16x128xf32>
    tpu.vector_store %arg7[%c0_14, %c0_15], %29 {strides = array<i32>} : memref<16x128xf32, #tpu.memory_space<vmem>>, vector<16x128xf32>,
    return
  }
  func.func @transform_0(%arg0: i32) -> i32 {
    %c0_i32 = arith.constant 0 : i32
    %c0_i32_0 = arith.constant 0 : i32
    return %c0_i32 : i32
  }
  func.func @transform_1(%arg0: i32) -> (i32, i32) {
    %c0_i32 = arith.constant 0 : i32
    %c0_i32_0 = arith.constant 0 : i32
    return %arg0, %c0_i32 : i32, i32
  }
  func.func @transform_2(%arg0: i32) -> (i32, i32) {
    %c0_i32 = arith.constant 0 : i32
    %c0_i32_0 = arith.constant 0 : i32
    %c0_i32_1 = arith.constant 0 : i32
    return %c0_i32, %c0_i32_0 : i32, i32
  }
  func.func @transform_3(%arg0: i32) -> (i32, i32) {
    %c0_i32 = arith.constant 0 : i32
    %c0_i32_0 = arith.constant 0 : i32
    %c0_i32_1 = arith.constant 0 : i32
    return %c0_i32, %c0_i32_0 : i32, i32
  }
  func.func @transform_4(%arg0: i32) -> (i32, i32) {
    %c0_i32 = arith.constant 0 : i32
    %c0_i32_0 = arith.constant 0 : i32
    %c0_i32_1 = arith.constant 0 : i32
    return %c0_i32, %c0_i32_0 : i32, i32
  }
  func.func @transform_5(%arg0: i32) -> (i32, i32) {
    %c0_i32 = arith.constant 0 : i32
    %c0_i32_0 = arith.constant 0 : i32
    %c0_i32_1 = arith.constant 0 : i32
    return %c0_i32, %c0_i32_0 : i32, i32
  }
  func.func @transform_6(%arg0: i32) -> (i32, i32) {
    %c0_i32 = arith.constant 0 : i32
    %c0_i32_0 = arith.constant 0 : i32
    return %arg0, %c0_i32 : i32, i32
  }
}

</mosaic_0001>

<bundles_post_ra>
// kernel: tpu_custom_call.1
= control target key start
LH: loop header
LB: loop body
LE: loop exit
PB: predicated region body
PF: predicated region fallthrough
CT: control target
= control target key end

     0   :  { %12 = vsyncpa [#allocation4], 0  ;;  %s437_s0 = inlined_call_operand.<no memory space> [shape: s32[1], index: 0, kind: input, shape index: {}]   ;;  %s438_s1 = inlined_call_operand.hbm [shape: f32[16,128], index: 1, kind: input, shape index: {}]   ;;  %s439_s2 = inlined_call_operand.vmem [shape: f32[1,128], index: 2, kind: input, shape index: {}]   ;;  %s440_s3 = inlined_call_operand.vmem [shape: f32[1,128], index: 3, kind: input, shape index: {}]   ;;  %s441_s4 = inlined_call_operand.hbm [shape: bf16[128,128], index: 4, kind: input, shape index: {}]   ;;  %s442_s5 = inlined_call_operand.vmem [shape: f32[1,128], index: 5, kind: input, shape index: {}]   ;;  %s443_s6 = inlined_call_operand.hbm [shape: f32[16,128], index: 6, kind: output, shape index: {}]  }
   0x1   :  { %13 = vsyncpa [#allocation7], 0 }
   0x2   :  { %14 = vsyncpa [#allocation5], 0  ;;  %s359_s0 = smov [#allocation3]  }
   0x3   :  { %s22_s21 = sshll.u32 %s359_s0, 4  ;;  %s23_s21 = int_to_ptr.vmem [resolvable:$true] %s22_s21 }
   0x4   :  { %s301_s22 = scalar_lea.vmem %s23_s21, 256  ;;  %p306_p1 = scmp.lt.s32.totalorder %s23_s21, %s23_s21 }
   0x5   :  { %p302_p0 = scmp.ne.s32.totalorder %s23_s21, %s301_s22  ;;  %p307_p2 = scmp.lt.s32.totalorder %s301_s22, %s301_s22 }
   0x7   :  { %p308_p3 = por %p307_p2, %p306_p1 }
   0x9   :  { %p309_p4 = pnand %p308_p3, %p302_p0 }
   0xb   :  { %312 = shalt.err (!%p309_p4)
}
   0xc   :  { %s360_s23 = smov 128   ;;  %s361_s24 = smov 8  }
   0xd   :  { %28 = dma.hbm_to_vmem [thread:$0]  %s438_s1, 256, %s23_s21, [#allocation4], %s360_s23, %s360_s23, %s361_s24  }
   0xe   :  { %s362_s27 = smov [#allocation6]  }
   0xf   :  { %s38_s28 = sshll.u32 %s362_s27, 4  ;;  %s39_s28 = int_to_ptr.vmem [resolvable:$true] %s38_s28 }
  0x10   :  { %s321_s29 = scalar_lea.vmem %s39_s28, 1024  ;;  %p326_p6 = scmp.lt.s32.totalorder %s39_s28, %s39_s28 }
  0x11   :  { %p322_p5 = scmp.ne.s32.totalorder %s39_s28, %s321_s29  ;;  %p327_p7 = scmp.lt.s32.totalorder %s321_s29, %s321_s29 }
  0x13   :  { %p328_p8 = por %p327_p7, %p326_p6 }
  0x15   :  { %p329_p9 = pnand %p328_p8, %p322_p5 }
  0x17   :  { %332 = shalt.err (!%p329_p9)
}
  0x18   :  { %s363_s30 = smov 64   ;;  %s364_s7 = smov 4  }
  0x19   :  { %44 = dma.hbm_to_vmem [thread:$0]  %s441_s4, 1024, %s39_s28, [#allocation7], %s363_s30, %s363_s30, %s364_s7  }
  0x1a   :  { %353 = dma.done.wait [#allocation4], 256  }
  0x1b   :  { %354 = vsyncadd [#allocation4], 4294967040 }
  0x1c   :  { %355 = dma.done.wait [#allocation7], 1024  }
  0x1d   :  { %356 = vsyncadd [#allocation7], 4294966272  ;;  %v412_v0 = vld [vmem:[#allocation3] sm:$0xff]  ;;  %v414_v1 = vld [vmem:[#allocation3 + $0x8] sm:$0xff]  ;;  %v365_v3 = vmov 0.0   ;;  %vm366_vm0 = vmmov 0  }
  0x1e   :  { %56 = vadd.xlane.f32.xlu0 %v412_v0  ;;  %v281_v2 = vld [vmem:[#allocation6 + $0x38] sm:$0xff]   ;;  %252 = vmatprep.subr.bf16.mxu0 %v365_v3  ;;  %v282_v12 = vld [vmem:[#allocation6 + $0x30] sm:$0xff]   ;;  %v283_v13 = vld [vmem:[#allocation6 + $0x28] sm:$0xff]  }
  0x1f   :  { %253 = vmatpush3.bf16.msra.mxu0 %v281_v2  ;;  %v284_v14 = vld [vmem:[#allocation6 + $0x20] sm:$0xff]   ;;  %268 = vmatprep.mubr.msk.bf16.mxu0 %vm366_vm0, %v365_v3  ;;  %v285_v15 = vld [vmem:[#allocation6 + $0x18] sm:$0xff]   ;;  %v286_v16 = vld [vmem:[#allocation6 + $0x10] sm:$0xff]  }
  0x20   :  { %254 = vmatprep.subr.bf16.mxu0 %v365_v3  ;;  %v287_v17 = vld [vmem:[#allocation6 + $0x8] sm:$0xff]   ;;  %v288_v18 = vld [vmem:[#allocation6] sm:$0xff]   ;;  %v232_v27 = vld [vmem:[%s439_s2] ss:$0 sm:$0xff]  ;;  %s367_s2 = smov [#allocation8]  }
  0x21   :  { %v233_v31 = vld [vmem:[%s440_s3] ss:$0 sm:$0xff]  ;;  %s219_s14 = sshll.u32 %s367_s2, 4  ;;  %s220_s14 = int_to_ptr.vmem [resolvable:$true] %s219_s14 }
  0x22   :  { %58 = vadd.xlane.f32.xlu0 %v414_v1  ;;  %v234_v36 = vld [vmem:[%s442_s5] ss:$0 sm:$0xff]  ;;  %s333_s3 = scalar_lea.vmem %s220_s14, 256  ;;  %p338_p11 = scmp.lt.s32.totalorder %s220_s14, %s220_s14 }
  0x23   :  { %255 = vmatpush3.bf16.msra.mxu0 %v282_v12  ;;  %p334_p10 = scmp.ne.s32.totalorder %s220_s14, %s333_s3  ;;  %p339_p12 = scmp.lt.s32.totalorder %s333_s3, %s333_s3 }
  0x24   :  { %256 = vmatprep.subr.bf16.mxu0 %v365_v3 }
  0x25   :  { %p340_p13 = por %p339_p12, %p338_p11 }
  0x27   :  { %257 = vmatpush3.bf16.msra.mxu0 %v283_v13  ;;  %p341_p0 = pnand %p340_p13, %p334_p10 }
  0x28   :  { %258 = vmatprep.subr.bf16.mxu0 %v365_v3 }
  0x2b   :  { %259 = vmatpush3.bf16.msra.mxu0 %v284_v14 }
  0x2c   :  { %260 = vmatprep.subr.bf16.mxu0 %v365_v3 }
  0x2f   :  { %261 = vmatpush3.bf16.msra.mxu0 %v285_v15 }
  0x30   :  { %262 = vmatprep.subr.bf16.mxu0 %v365_v3 }
  0x33   :  { %263 = vmatpush3.bf16.msra.mxu0 %v286_v16 }
  0x34   :  { %264 = vmatprep.subr.bf16.mxu0 %v365_v3 }
  0x37   :  { %265 = vmatpush3.bf16.msra.mxu0 %v287_v17 }
  0x38   :  { %266 = vmatprep.subr.bf16.mxu0 %v365_v3 }
  0x3b   :  { %267 = vmatpush3.bf16.msra.mxu0 %v288_v18 }
  0xa7   :  { %v57_v4 = vpop.xlane.xlu0 %56 }
  0xa8   :  { %v61_v5 = vmul.f32 0.0078125, %v57_v4 }
  0xaa   :  { %v63_v6 = vsub.f32 %v412_v0, %v61_v5 }
  0xab   :  { %v59_v7 = vpop.xlane.xlu0 %58 }
  0xac   :  { %v62_v8 = vmul.f32 0.0078125, %v59_v7  ;;  %v65_v9 = vmul.f32 %v63_v6, %v63_v6 }
  0xae   :  { %v64_v10 = vsub.f32 %v414_v1, %v62_v8  ;;  %67 = vadd.xlane.f32.xlu1 %v65_v9 }
  0xb0   :  { %v66_v11 = vmul.f32 %v64_v10, %v64_v10 }
  0xb2   :  { %69 = vadd.xlane.f32.xlu1 %v66_v11 }
 0x137   :  { %v68_v19 = vpop.xlane.xlu1 %67 }
 0x138   :  { %v71_v20 = vmul.f32 0.0078125, %v68_v19 }
 0x13a   :  { %v73_v21 = vadd.f32 1e-06, %v71_v20 }
 0x13b   :  { %v70_v22 = vpop.xlane.xlu1 %69 }
 0x13c   :  { %289 = vrsqrt.f32 %v73_v21  ;;  %v72_v23 = vmul.f32 0.0078125, %v70_v22 }
 0x13e   :  { %v74_v24 = vadd.f32 1e-06, %v72_v23 }
 0x140   :  { %291 = vrsqrt.f32 %v74_v24 }
 0x149   :  { %v290_v25 = vpop.eup %289 }
 0x14a   :  { %v77_v26 = vmul.f32 %v290_v25, %v63_v6 }
 0x14c   :  { %v86_v30 = vmul.f32 %v232_v27, %v77_v26 }
 0x14d   :  { %v292_v28 = vpop.eup %291 }
 0x14e   :  { %v78_v29 = vmul.f32 %v292_v28, %v64_v10  ;;  %v95_v33 = vadd.f32 %v233_v31, %v86_v30 }
 0x150   :  { %v87_v32 = vmul.f32 %v232_v27, %v78_v29 }
 0x152   :  { %v96_v34 = vadd.f32 %v233_v31, %v87_v32 }
 0x154   :  { %v97_v35 = vpack.c.bf16 %v96_v34, %v95_v33 }
 0x156   :  { %269 = vmatmul.mubr.bf16.vlgmr.msra.gmra.mxu0 %v97_v35 }
 0x216   :  { %v203_v37 = vpop.f32.mrf.mxu0 }
 0x217   :  { %v204_v38 = vadd.f32 %v234_v36, %v203_v37 }
 0x218   :  { %v270_v39 = vpop.f32.mrf.mxu0 }
 0x219   :  { %v210_v40 = vadd.f32 %v204_v38, %v412_v0 }
 0x21a   :  { %v206_v41 = vpop.f32.mrf.mxu0 }
 0x21b   :  { %212 = vst [vmem:[#allocation8] sm:$0xff] %v210_v40  ;;  %v207_v42 = vadd.f32 %v234_v36, %v206_v41 }
 0x21c   :  { %v271_v43 = vpop.f32.mrf.mxu0 }
 0x21d   :  { %v211_v44 = vadd.f32 %v207_v42, %v414_v1 }
 0x21f   :  { %213 = vst [vmem:[#allocation8 + $0x8] sm:$0xff] %v211_v44 }
 0x220   :  { %344 = shalt.err (!%p341_p0)
}
 0x221   :  { %225 = dma.vmem_to_hbm [thread:$0]  %s220_s14, 256, %s443_s6, [#allocation5], %s360_s23, %s360_s23, %s361_s24  }
 0x222   :  { %357 = dma.done.wait [#allocation5], 256  }
 0x223   :  { %358 = vsyncadd [#allocation5], 4294967040 }
 0x224   :  { %229 = vsyncpa [#allocation4], 1 }
 0x225   :  { %230 = vsyncpa [#allocation7], 1 }
 0x226   :  { %231 = vsyncpa [#allocation5], 1 }

</bundles_post_ra>
